<compile_context>
chip_gen: v7x
topology: tpu7x:2x2x1
jax: 0.10.0
libtpu: 0.0.40
codegen_flags: <defaults>
</compile_context>

<pallas_src>
import functools
import math

import jax
import jax.numpy as jnp
from jax.experimental import pallas as pl
from jax.experimental.pallas import tpu as pltpu


# ----------------------------- kernels ------------------------------------


def _pw_kernel_direct(x_ref, w_ref, b_ref, o_ref, *, compute_dtype=None):
    # Used when the whole C_in fits in one block (no reduction grid axis).
    # x_ref: (Cin, TL)  w_ref: (TCO, Cin)  b_ref: (TCO, 1)  o_ref: (TCO, TL)
    x = x_ref[...]
    w = w_ref[...]
    if compute_dtype is not None:
        x = x.astype(compute_dtype)
        w = w.astype(compute_dtype)
    acc = jnp.dot(w, x, preferred_element_type=jnp.float32)       # (TCO, TL)
    o_ref[...] = (acc + b_ref[...].astype(jnp.float32)).astype(o_ref.dtype)


def _pw_kernel_acc(x_ref, w_ref, b_ref, o_ref, acc_ref, *, compute_dtype=None):
    # K (C_in) tiled path: f32 VMEM accumulator, K is the innermost grid axis.
    k = pl.program_id(3)

    @pl.when(k == 0)
    def _():
        acc_ref[...] = jnp.zeros_like(acc_ref)

    x = x_ref[...]
    w = w_ref[...]
    if compute_dtype is not None:
        x = x.astype(compute_dtype)
        w = w.astype(compute_dtype)
    acc_ref[...] += jnp.dot(w, x, preferred_element_type=jnp.float32)

    @pl.when(k == pl.num_programs(3) - 1)
    def _():
        out = acc_ref[...] + b_ref[...].astype(jnp.float32)
        o_ref[...] = out.astype(o_ref.dtype)


# --------------------------- tile selection --------------------------------


def _vmem_budget_bytes():
    """Per-call VMEM budget, sized per TPU generation with headroom left for
    Mosaic internal scratch (v5e/v6e: 128 MiB physical, v7x: 64 MiB)."""
    cap = None
    try:
        cap = pltpu.get_tpu_info().vmem_capacity_bytes
    except Exception:
        cap = None
    if not cap:
        cap = 64 * 1024 * 1024          # conservative fallback: v7x per-TC VMEM
    return min(int(cap * 0.7), 96 * 1024 * 1024)


def _choose_k_tile(cin):
    """C_in (reduction) tile: whole C_in when small, else a 128-multiple
    divisor (partial K tiles are forbidden — padded lanes would corrupt the
    reduction)."""
    if cin <= 1024:
        return cin
    for cand in (1024, 512, 256, 128):
        if cin % cand == 0:
            return cand
    return cin


def _choose_co_tile(cout):
    """C_out tile: whole C_out when small, else a 128-multiple divisor."""
    if cout <= 1024:
        return cout
    for cand in (1024, 512, 256, 128):
        if cout % cand == 0:
            return cand
    return cout


def _choose_l_tile(l_out, lane_budget_bytes, per_lane_bytes):
    """Largest L (lane) tile under the VMEM budget: full L for small problems,
    otherwise a multiple of 128 (lane-dense, unmasked vst stores)."""
    if l_out <= 128:
        return l_out
    tl = lane_budget_bytes // max(per_lane_bytes, 1)
    tl = max(128, (tl // 128) * 128)
    return int(min(l_out, tl))


# ------------------------------ wrapper -------------------------------------


def pointwise_conv(x, weight, bias=None, *, stride=1, padding=0,
                   compute_dtype=None, l_tile=None, co_tile=None, k_tile=None):
    """1x1 Conv1d via a Pallas NCL matmul kernel.

    x:      (B, C_in, L)       -- NCL, same layout as PyTorch Conv1d input
    weight: (C_out, C_in, 1)   (or (C_out, C_in))
    bias:   (C_out,) or None
    returns (B, C_out, L_out)
    """
    B, Cin, L = x.shape
    Cout = weight.shape[0]

    # kernel_size=1 stride/padding are pure indexing glue (defaults: identity).
    if padding:
        x = jnp.pad(x, ((0, 0), (0, 0), (padding, padding)))
    if stride != 1:
        x = x[:, :, ::stride]
    L_out = x.shape[2]

    w2d = weight.reshape(Cout, Cin)
    if bias is None:
        bias = jnp.zeros((Cout,), x.dtype)
    b2d = bias.reshape(Cout, 1)

    itemsize = jnp.dtype(x.dtype).itemsize
    budget = _vmem_budget_bytes()

    tk = int(k_tile) if k_tile is not None else _choose_k_tile(Cin)
    tco = int(co_tile) if co_tile is not None else _choose_co_tile(Cout)
    num_k = pl.cdiv(Cin, tk)
    num_co = pl.cdiv(Cout, tco)
    if num_k > 1 and Cin % tk != 0:
        raise ValueError("k_tile must evenly divide C_in "
                         "(padded K tiles would corrupt the reduction).")

    # Honest VMEM accounting (double buffers included).
    weight_resident = (num_co == 1 and num_k == 1)
    if weight_resident:
        wb_bytes = Cout * Cin * itemsize + Cout * itemsize           # 1x, resident
    else:
        wb_bytes = 2 * (tco * tk + tco) * itemsize                   # 2x, pipelined
    per_lane = (2 * tk * itemsize                      # x block, double-buffered
                + 2 * tco * itemsize                   # out block, double-buffered
                + (4 * tco if num_k > 1 else 0))       # f32 accumulator scratch
    if l_tile is not None:
        tl = int(l_tile)
    else:
        tl = _choose_l_tile(L_out, budget - wb_bytes, per_lane)
    num_l = pl.cdiv(L_out, tl)

    # v7x shards "parallel" grid axes across 2 TensorCores: avoid a 1-step grid.
    if l_tile is None and B * num_co * num_l < 2 and L_out > 128:
        tl = max(128, ((pl.cdiv(L_out, 2) + 127) // 128) * 128)
        if tl >= L_out:
            tl = L_out
        num_l = pl.cdiv(L_out, tl)

    # Block specs.  Grid order: (B, CO, L, K) — weight index constant over the
    # inner L loop, K innermost for the accumulator.
    x_spec = pl.BlockSpec((None, tk, tl), lambda b, co, l, k: (b, k, l))
    if weight_resident:
        # Whole weight/bias live in VMEM once for the entire grid
        # (single-buffered, no per-step re-DMA).
        w_spec = pl.BlockSpec(memory_space=pltpu.MemorySpace.VMEM)
        b_spec = pl.BlockSpec(memory_space=pltpu.MemorySpace.VMEM)
    else:
        w_spec = pl.BlockSpec((tco, tk), lambda b, co, l, k: (co, k))
        b_spec = pl.BlockSpec((tco, 1), lambda b, co, l, k: (co, 0))
    out_spec = pl.BlockSpec((None, tco, tl), lambda b, co, l, k: (b, co, l))

    if num_k == 1:
        kernel = functools.partial(_pw_kernel_direct, compute_dtype=compute_dtype)
        scratch = []
    else:
        kernel = functools.partial(_pw_kernel_acc, compute_dtype=compute_dtype)
        scratch = [pltpu.VMEM((tco, tl), jnp.float32)]

    flops = 2 * B * L_out * Cin * Cout
    w_reads = 1 if weight_resident else B * num_l * num_co
    bytes_accessed = (B * Cin * L_out * itemsize * num_co    # x (re-read per CO tile)
                      + Cout * Cin * itemsize * w_reads      # weight
                      + Cout * itemsize                      # bias
                      + B * Cout * L_out * itemsize)         # output

    out = pl.pallas_call(
        kernel,
        out_shape=jax.ShapeDtypeStruct((B, Cout, L_out), x.dtype),
        grid_spec=pltpu.PrefetchScalarGridSpec(
            num_scalar_prefetch=0,
            grid=(B, num_co, num_l, num_k),
            in_specs=[x_spec, w_spec, b_spec],
            out_specs=out_spec,
            scratch_shapes=scratch),
        compiler_params=pltpu.CompilerParams(
            dimension_semantics=("parallel", "parallel", "parallel", "arbitrary"),
            vmem_limit_bytes=budget),
        cost_estimate=pl.CostEstimate(
            flops=flops, transcendentals=0, bytes_accessed=int(bytes_accessed)),
    )(x, w2d, b2d)
    return out


def init_params(key, in_channels, out_channels):
    """Deterministic PyTorch-style (kaiming-uniform) Conv1d init."""
    k_w, k_b = jax.random.split(key)
    fan_in = in_channels * 1  # kernel_size = 1
    bound_w = math.sqrt(1.0 / fan_in) * math.sqrt(3.0)  # kaiming_uniform a=sqrt(5)
    weight = jax.random.uniform(
        k_w, (out_channels, in_channels, 1), jnp.float32, -bound_w, bound_w)
    bound_b = 1.0 / math.sqrt(fan_in)
    bias = jax.random.uniform(
        k_b, (out_channels,), jnp.float32, -bound_b, bound_b)
    return weight, bias


if __name__ == "__main__":
    key = jax.random.PRNGKey(0)
    k_x, k_p, k_x2, k_p2 = jax.random.split(key, 4)

    # --- Test 1: module-default small shapes (resident-weight fast path). ---
    B, Cin, Cout, L = 2, 4, 8, 16
    x = jax.random.normal(k_x, (B, Cin, L), jnp.float32)
    weight, bias = init_params(k_p, Cin, Cout)
    y = jax.block_until_ready(pointwise_conv(x, weight, bias))
    y_ref = jnp.einsum("bcl,oc->bol", x, weight[:, :, 0]) + bias[None, :, None]
    assert y.shape == (B, Cout, L)
    assert jnp.allclose(y, y_ref, atol=1e-5, rtol=1e-5)

    # --- Test 2: force the Cout-tiled / K-accumulator path (still small). ---
    B2, Cin2, Cout2, L2 = 1, 256, 256, 256
    x2 = jax.random.normal(k_x2, (B2, Cin2, L2), jnp.float32)
    weight2, bias2 = init_params(k_p2, Cin2, Cout2)
    y2 = jax.block_until_ready(
        pointwise_conv(x2, weight2, bias2, l_tile=128, co_tile=128, k_tile=128))
    y2_ref = (jnp.einsum("bcl,oc->bol", x2, weight2[:, :, 0],
                         precision=jax.lax.Precision.HIGHEST)
              + bias2[None, :, None])
    assert y2.shape == (B2, Cout2, L2)
    assert jnp.allclose(y2, y2_ref, atol=1e-1, rtol=1e-2)

    print("KERNEL_OK")
</pallas_src>

<mosaic_0001>
module attributes {stable_mosaic.version = 11 : i64} {
  func.func @_pw_kernel_direct(%arg0: i32, %arg1: i32, %arg2: i32, %arg3: i32, %arg4: memref<1x4x16xf32, #tpu.memory_space<vmem>>, %arg5: memref<8x4xf32, #tpu.memory_space<vmem>>, %arg6: memref<8x1xf32, #tpu.memory_space<vmem>>, %arg7: memref<1x8x16xf32, #tpu.memory_space<vmem>>) attributes {dimension_semantics = [#tpu.dimension_semantics<parallel>, #tpu.dimension_semantics<parallel>, #tpu.dimension_semantics<parallel>, #tpu.dimension_semantics<arbitrary>], iteration_bounds = array<i64: 2, 1, 1, 1>, scalar_prefetch = 0 : i64, scratch_operands = 0 : i64, tpu.core_type = #tpu.core_type<tc>, window_params = [{transform_indices = @transform_0, window_bounds = array<i64: 1, 4, 16>}, {pipeline_mode = #tpu.pipeline_mode<synchronous>, transform_indices = @transform_1, window_bounds = array<i64: 8, 4>}, {pipeline_mode = #tpu.pipeline_mode<synchronous>, transform_indices = @transform_2, window_bounds = array<i64: 8, 1>}, {transform_indices = @transform_3, window_bounds = array<i64: 1, 8, 16>}]} {
    %c0 = arith.constant 0 : index
    %c0_0 = arith.constant 0 : index
    %c0_1 = arith.constant 0 : index
    %0 = vector.load %arg4[%c0, %c0_0, %c0_1] : memref<1x4x16xf32, #tpu.memory_space<vmem>>, vector<1x4x16xf32>
    %1 = vector.shape_cast %0 : vector<1x4x16xf32> to vector<4x16xf32>
    %c0_2 = arith.constant 0 : index
    %c0_3 = arith.constant 0 : index
    %2 = vector.load %arg5[%c0_2, %c0_3] : memref<8x4xf32, #tpu.memory_space<vmem>>, vector<8x4xf32>
    %cst = arith.constant dense<0.000000e+00> : vector<8x16xf32>
    %3 = tpu.matmul %2, %1, %cst {dimension_numbers = #tpu.dot_dimension_numbers<[1], [0], [0], [1], [0, 0, 1, 1], [], []>} : vector<8x4xf32>, vector<4x16xf32>, vector<8x16xf32> -> vector<8x16xf32>
    %c0_4 = arith.constant 0 : index
    %c0_5 = arith.constant 0 : index
    %4 = vector.load %arg6[%c0_4, %c0_5] : memref<8x1xf32, #tpu.memory_space<vmem>>, vector<8x1xf32>
    %5 = vector.broadcast %4 : vector<8x1xf32> to vector<8x16xf32>
    %6 = arith.addf %3, %5 : vector<8x16xf32>
    %c0_6 = arith.constant 0 : index
    %c0_7 = arith.constant 0 : index
    %c0_8 = arith.constant 0 : index
    %7 = vector.load %arg7[%c0_6, %c0_7, %c0_8] : memref<1x8x16xf32, #tpu.memory_space<vmem>>, vector<1x8x16xf32>
    %8 = vector.shape_cast %7 : vector<1x8x16xf32> to vector<8x16xf32>
    %9 = vector.shape_cast %6 : vector<8x16xf32> to vector<1x8x16xf32>
    tpu.vector_store %arg7[%c0_6, %c0_7, %c0_8], %9 {strides = array<i32>} : memref<1x8x16xf32, #tpu.memory_space<vmem>>, vector<1x8x16xf32>,
    return
  }
  func.func @transform_0(%arg0: i32, %arg1: i32, %arg2: i32, %arg3: i32) -> (i32, i32, i32) {
    %c0_i32 = arith.constant 0 : i32
    return %arg0, %arg3, %arg2 : i32, i32, i32
  }
  func.func @transform_1(%arg0: i32, %arg1: i32, %arg2: i32, %arg3: i32) -> (i32, i32) {
    %c0_i32 = arith.constant 0 : i32
    %c0_i32_0 = arith.constant 0 : i32
    %c0_i32_1 = arith.constant 0 : i32
    return %c0_i32, %c0_i32_0 : i32, i32
  }
  func.func @transform_2(%arg0: i32, %arg1: i32, %arg2: i32, %arg3: i32) -> (i32, i32) {
    %c0_i32 = arith.constant 0 : i32
    %c0_i32_0 = arith.constant 0 : i32
    %c0_i32_1 = arith.constant 0 : i32
    return %c0_i32, %c0_i32_0 : i32, i32
  }
  func.func @transform_3(%arg0: i32, %arg1: i32, %arg2: i32, %arg3: i32) -> (i32, i32, i32) {
    %c0_i32 = arith.constant 0 : i32
    return %arg0, %arg1, %arg2 : i32, i32, i32
  }
}

</mosaic_0001>

<bundles_post_ra>
// kernel: tpu_custom_call.1
= control target key start
LH: loop header
LB: loop body
LE: loop exit
PB: predicated region body
PF: predicated region fallthrough
CT: control target
= control target key end

     0   :  { %8 = vsyncpa [#allocation3], 0  ;;  %s704_s0 = inlined_call_operand.vmem [shape: f32[2,4,16], index: 0, kind: input, shape index: {}]   ;;  %s705_s1 = inlined_call_operand.vmem [shape: f32[8,4], index: 1, kind: input, shape index: {}]   ;;  %s706_s2 = inlined_call_operand.vmem [shape: f32[8,1], index: 2, kind: input, shape index: {}]   ;;  %s707_s3 = inlined_call_operand.hbm [shape: f32[2,8,16], index: 3, kind: output, shape index: {}]  }
   0x1   :  { %10 = vsyncpa [#allocation3 + $0x1], 0  ;;  %s586_s12 = smov 0   ;;  %s588_s13 = smov 0  }
   0x2   :  { %s590_s14 = smov 0   ;;  %s592_s15 = smov 0  }
   0x3   :  { %s594_s16 = smov 0   ;;  %s596_s17 = smov 0  }
   0x4 LB: > { %s403_s18 = sadd.s32 4294967295, %s560_s17   ;;  %s404_s19 = sadd.s32 4294967294, %s560_s17   ;;  %s560_s17 = sphi %s596_s17, %s16_s17   ;;  %s556_s16 = sphi %s594_s16, %s714_s16   ;;  %s552_s15 = sphi %s592_s15, %s713_s15   ;;  %s548_s14 = sphi %s590_s14, %s712_s14   ;;  %s544_s13 = sphi %s588_s13, %s711_s13   ;;  %s540_s12 = sphi %s586_s12, %s710_s12  }
   0x5   : > { %s42_s20 = sadd.s32 1, %s556_s16  ;;  %s125_s21 = sadd.s32 1, %s548_s14 }
   0x6   : > { %p44_p0 = scmp.ge.s32.totalorder %s42_s20, 2  ;;  %p135_p1 = scmp.ne.s32.totalorder %s548_s14, %s544_s13 }
   0x7   : > { %p136_p2 = scmp.eq.s32.totalorder %s403_s18, 1  ;;  %p141_p3 = scmp.ne.s32.totalorder %s544_s13, %s540_s12 }
   0x8   : > { %s716_s20 = smov (%p44_p0, %s42_s20), 0  ;;  %p142_p5 = scmp.eq.s32.totalorder %s404_s19, 1 }
   0x9   : > { %p626_p4 = por %p136_p2, %p135_p1  ;;  %s118_s23 = ssub.s32 %s556_s16, %s716_s20 }
   0xa   : > { %p407_p6 = scmp.ge.s32.totalorder %s560_s17, 1  ;;  %p123_p7 = scmp.eq.s32.totalorder %s118_s23, 0 }
   0xb   : > { %p633_p8 = por %p142_p5, %p141_p3  ;;  %p179_p9 = scmp.lt.s32.totalorder %s560_s17, 3 }
   0xc   : > { %s639_s25 = scalar_select %p123_p7, %s548_s14, %s125_s21  }
   0xd   : > { %p180_p10 = pnand %p407_p6, %p179_p9 }
   0xe   : > { %p208_p11 = scmp.lt.s32.totalorder (!%p180_p10), %s552_s15, 1  ;;  %v562_v0 = vmov (!%p180_p10), 0.0   ;;  %vm563_vm0 = vmmov (!%p180_p10), 0   ;;  %v220_v1 = vld [vmem:[%s706_s2] sm:$0xff] (!%p180_p10)  ;;  %v564_v2 = vmov (!%p180_p10), 0   ;;  %vm230_vm1 = vcmask (!%p180_p10), 1043456  }
   0xf   : > { %183 = sbr.rel (%p180_p10) target bundleno = 256 (0x100), region = 32  ;;  %418 = vmatprep.subr.mxu0 (!%p180_p10), %v562_v0  ;;  %420 = vmatprep.mubr.msk.f32.mxu0 (!%p180_p10), %vm563_vm0, %v562_v0  ;;  %v219_v3 = vld [vmem:[%s705_s1] sm:$0xff] (!%p180_p10)  ;;  %vm226_vm2 = vcmask (!%p180_p10), 31744   ;;  %s205_s8 = sand.u32 (!%p180_p10), 1, %s544_s13   ;;  %vm304_vm3 = vcmask (!%p180_p10), 130048  }
  0x10   : > { %481 = vset.pattern.permute.xlu0 (!%p180_p10), %v564_v2  ;;  %s408_s9 = sshll.u32 (!%p180_p10), %s205_s8, 3  ;;  %s413_s10 = sshll.u32 (!%p180_p10), %s552_s15, 7 }
  0x11   : > { %223 = vperm.xlu0 (!%p180_p10), %481, %v220_v1   ;;  %s207_s11 = scalar_lea.vmem (!%p180_p10), [#allocation2], %s408_s9  ;;  %s657_s23 = scalar_lea.hbm (!%p180_p10), %s707_s3, %s413_s10 }
  0x12   : > { %s322_s18 = sshll.u32 (!%p180_p10), %s207_s11, 4  ;;  %s307_s26 = scalar_lea.sflag (!%p180_p10), [#allocation3], %s205_s8  ;;  %s659_s18 = int_to_ptr.vmem [resolvable:$true] %s322_s18 }
  0x13   : > { %s482_s27 = scalar_lea.vmem (!%p180_p10), %s659_s18, 128 }
  0x14   : > { %p483_p12 = scmp.ne.s32.totalorder (!%p180_p10), %s659_s18, %s482_s27 }
  0x16   : > { %s209_s28 = scalar_select %p208_p11, %s552_s15, 1 }
  0x17   : > { %p484_p13 = pnand %p483_p12, %p626_p4  ;;  %s565_s15 = smov [#allocation2]  }
  0x18   : > { %s409_s29 = sshll.u32 %s209_s28, 2  ;;  %s486_s28 = sshll.u32 %s565_s15, 4  ;;  %s487_s28 = int_to_ptr.vmem [resolvable:$false] %s486_s28 }
  0x19   : > { %s217_s5 = scalar_lea.vmem %s704_s0, %s409_s29  ;;  %p485_p0 = pneg %p484_p13 }
  0x1a   : > { %v218_v4 = vld [vmem:[%s217_s5] sm:$0xf]  ;;  %s488_s29 = scalar_lea.vmem %s487_s28, 256  ;;  %p489_p1 = scmp.lt.s32.totalorder %s659_s18, %s487_s28 }
  0x1b   : > { %419 = vmatpush3.msk.msra.mxu0 %vm230_vm1, %v218_v4  ;;  %p490_p2 = scmp.lt.s32.totalorder %s488_s29, %s482_s27 }
  0x1c   : > { %421 = vmatmul.mubr.msk.f32.vlgmr.msra.gmra.mrb[0].mxu0 %vm226_vm2, %v219_v3 }
  0x1d   : > { %p491_p3 = por %p490_p2, %p489_p1 }
  0x1f   : > { %p492_p5 = pnand %p491_p3, %p485_p0 }
  0x90   : > { %v224_v5 = vpop.permute.xlu0 %223 }
  0xef   : > { %v300_v6 = vpop.f32.mrb[0].mxu0 }
  0xf0   : > { %v301_v7 = vadd.f32 %v300_v6, %v224_v5  ;;  %v422_v8 = vpop.f32.mrb[1].mxu0 }
  0xf2   : > { %305 = vst.msk [vmem:[%s207_s11] sm:$0xff] %vm304_vm3, %v301_v7 }
  0xf3   : > { %495 = shalt.err (!%p492_p5)
}
  0xf4   : > { %s496_s30 = scalar_lea.hbm %s657_s23, 128  ;;  %s500_s6 = scalar_lea.hbm %s707_s3, 256 }
  0xf5   : > { %p497_p6 = scmp.ne.s32.totalorder %s657_s23, %s496_s30  ;;  %p501_p10 = scmp.lt.u32.totalorder %s657_s23, %s707_s3 }
  0xf6   : > { %p502_p11 = scmp.lt.u32.totalorder %s500_s6, %s496_s30  ;;  %p504_p13 = scmp.lt.u32.totalorder %s496_s30, %s657_s23 }
  0xf7   : > { %p498_p7 = pnand %p497_p6, %p626_p4 }
  0xf8   : > { %p503_p12 = por %p502_p11, %p501_p10 }
  0xf9   : > { %p499_p9 = pneg %p498_p7 }
  0xfa   : > { %p505_p0 = por %p504_p13, %p503_p12 }
  0xfc   : > { %p506_p1 = pnand %p505_p0, %p499_p9 }
  0xfe   : > { %509 = shalt.err (!%p506_p1)
}
  0xff   : > { %423 = dma.vmem_to_hbm [thread:$0]  (%p626_p4), %s659_s18, 128, %s657_s23, %s307_s26  }
 0x100 PF: > { %p429_p2 = scmp.ge.s32.totalorder %s560_s17, 2  ;;  %s334_s9 = sand.u32 1, %s540_s12  }
 0x101   : > { %s335_s10 = scalar_lea.sflag [#allocation3], %s334_s9 }
 0x102   : > { %p426_p3 = pnand %p429_p2, %p633_p8 }
 0x104   : > { %535 = dma.done.wait (!%p426_p3), %s335_s10, 128  }
 0x105   : > { %537 = vsyncadd (!%p426_p3), %s335_s10, 4294967168  ;;  %s16_s17 = sadd.s32 1, %s560_s17   ;;  %s710_s12 = smov %s544_s13 }
 0x106   : > { %p13_p5 = scmp.ge.s32.totalorder %s16_s17, 4   ;;  %s711_s13 = smov %s548_s14 }
 0x107   : > { %s712_s14 = smov %s639_s25  ;;  %s713_s15 = smov %s556_s16 }
 0x108   : > { %s714_s16 = smov %s716_s20  ;;  %15 = sbr.rel (!%p13_p5) target bundleno = 4 (0x4), region = 67 }
 0x10f   :  { %340 = vsyncpa [#allocation3], 1 }
 0x110   :  { %342 = vsyncpa [#allocation3 + $0x1], 1 }

</bundles_post_ra>
